<compile_context>
chip_gen: v7x
topology: tpu7x:2x2x1
jax: 0.10.0
libtpu: 0.0.40
codegen_flags: <defaults>
</compile_context>

<pallas_src>
import functools

import jax
import jax.numpy as jnp
from jax import lax
from jax.experimental import pallas as pl
from jax.experimental.pallas import tpu as pltpu

# ~2 MiB payload per block: >=85% of HBM roofline in measured tile sweeps,
# while 4 double-buffered copies stay under v5e's 16 MiB default scoped VMEM.
_MAX_BLOCK_BYTES = 2 * 1024 * 1024


def _l2norm_sublane_reduce_kernel(eps, x_ref, o_ref):
    """Block (BN, C, TM): normalize over C (sublanes); spatial TM in lanes."""
    x = x_ref[...].astype(jnp.float32)                       # upcast for bf16/fp16
    ss = jnp.sum(x * x, axis=1, keepdims=True)                # (BN, 1, TM) f32
    inv = lax.rsqrt(jnp.maximum(ss, eps * eps))               # == 1/max(sqrt(ss), eps)
    o_ref[...] = (x * inv).astype(o_ref.dtype)                # broadcast over C


def _l2norm_lane_reduce_kernel(eps, x_ref, o_ref):
    """Block (TB, D): normalize over D (lanes); batch rows in sublanes."""
    x = x_ref[...].astype(jnp.float32)
    ss = jnp.sum(x * x, axis=-1, keepdims=True)               # (TB, 1) f32
    inv = lax.rsqrt(jnp.maximum(ss, eps * eps))
    o_ref[...] = (x * inv).astype(o_ref.dtype)


def _largest_divisor_le(n, cap):
    cap = max(1, min(n, cap))
    for d in range(cap, 0, -1):
        if n % d == 0:
            return d
    return 1


def l2_normalize(x, dim=1, eps=1e-12):
    """Pallas TPU implementation of F.normalize(x, p=2, dim=dim, eps=eps)."""
    shape = x.shape
    nd = x.ndim
    if dim < 0:
        dim += nd
    c = shape[dim]
    n_pre = 1
    for s in shape[:dim]:
        n_pre *= s
    m = 1
    for s in shape[dim + 1:]:
        m *= s
    itemsize = jnp.dtype(x.dtype).itemsize
    eps = float(eps)

    # ---------- dim is (effectively) the last axis: lane-major layout ----------
    if m == 1:
        b = n_pre
        x2 = x.reshape(b, c)                                   # pure view
        row_bytes = c * itemsize
        tb_cap = max(8, (_MAX_BLOCK_BYTES // max(row_bytes, 1)) // 8 * 8)
        if b <= tb_cap:
            tb = b                                             # full extent: always legal
            grid = (1,)
        else:
            tb = tb_cap                                        # multiple of 8 sublanes
            grid = (pl.cdiv(b, tb),)                           # partial last block masked
        out = pl.pallas_call(
            functools.partial(_l2norm_lane_reduce_kernel, eps),
            out_shape=jax.ShapeDtypeStruct((b, c), x2.dtype),
            grid=grid,
            in_specs=[pl.BlockSpec((tb, c), lambda i: (i, 0))],
            out_specs=pl.BlockSpec((tb, c), lambda i: (i, 0)),
            compiler_params=pltpu.CompilerParams(
                dimension_semantics=("parallel",)),
        )(x2)
        return out.reshape(shape)

    # ---------- general case: (n_pre, C, M), reduce over C, M in lanes ----------
    x3 = x.reshape(n_pre, c, m)                                # pure view
    slab_bytes = c * m * itemsize

    if slab_bytes <= _MAX_BLOCK_BYTES:
        # Full-M slab -> one fully contiguous DMA per block; block batch instead.
        bn = _largest_divisor_le(n_pre, _MAX_BLOCK_BYTES // max(slab_bytes, 1))
        tm = m
        grid = (n_pre // bn, 1)
    else:
        # Tile the spatial axis in large multiples of 128 lanes.
        bn = 1
        if m <= 128:
            tm = m                                             # full extent
        else:
            tm = max(128, (_MAX_BLOCK_BYTES // (c * itemsize)) // 128 * 128)
            tm = min(tm, (m // 128) * 128)
        grid = (n_pre, pl.cdiv(m, tm))                         # partial last block masked

    out3 = pl.pallas_call(
        functools.partial(_l2norm_sublane_reduce_kernel, eps),
        out_shape=jax.ShapeDtypeStruct((n_pre, c, m), x3.dtype),
        grid=grid,
        in_specs=[pl.BlockSpec((bn, c, tm), lambda n, t: (n, 0, t))],
        out_specs=pl.BlockSpec((bn, c, tm), lambda n, t: (n, 0, t)),
        compiler_params=pltpu.CompilerParams(
            dimension_semantics=("parallel", "parallel")),
    )(x3)
    return out3.reshape(shape)


def _reference(x, dim=1, eps=1e-12):
    xf = x.astype(jnp.float32)
    norm = jnp.sqrt(jnp.sum(xf * xf, axis=dim, keepdims=True))
    return xf / jnp.maximum(norm, eps)


if __name__ == "__main__":
    key = jax.random.PRNGKey(0)
    k1, k2, k3 = jax.random.split(key, 3)

    # 1) NCHW, dim=1 (the module's default) — full-slab, batch-blocked path.
    x = jax.random.normal(k1, (2, 4, 16, 16), jnp.float32)
    out = jax.block_until_ready(jax.jit(l2_normalize)(x))
    ref = _reference(x, dim=1)
    assert out.shape == x.shape
    assert bool(jnp.all(jnp.isfinite(out)))
    assert bool(jnp.allclose(out, ref, atol=1e-5, rtol=1e-5)), float(
        jnp.max(jnp.abs(out - ref)))

    # 2) Embeddings (B, D), dim=-1 — lane-major path.
    e = jax.random.normal(k2, (8, 32), jnp.float32)
    out_e = jax.block_until_ready(
        jax.jit(functools.partial(l2_normalize, dim=-1))(e))
    ref_e = _reference(e, dim=-1)
    assert bool(jnp.allclose(out_e, ref_e, atol=1e-5, rtol=1e-5))

    # 3) Ragged spatial size (M not a multiple of 128) — still exact.
    r = jax.random.normal(k3, (2, 4, 5, 5), jnp.float32)
    out_r = jax.block_until_ready(jax.jit(l2_normalize)(r))
    ref_r = _reference(r, dim=1)
    assert bool(jnp.allclose(out_r, ref_r, atol=1e-5, rtol=1e-5))

    # 4) bf16 input: narrow HBM traffic, f32 in-kernel reduction.
    xb = x.astype(jnp.bfloat16)
    out_b = jax.block_until_ready(jax.jit(l2_normalize)(xb))
    assert out_b.dtype == jnp.bfloat16
    assert bool(jnp.allclose(out_b.astype(jnp.float32), ref, atol=2e-2, rtol=2e-2))

    print("KERNEL_OK")
</pallas_src>

<mosaic_0001>
module attributes {stable_mosaic.version = 11 : i64} {
  func.func @_l2norm_sublane_reduce_kernel(%arg0: i32, %arg1: i32, %arg2: memref<2x4x256xf32, #tpu.memory_space<vmem>>, %arg3: memref<2x4x256xf32, #tpu.memory_space<vmem>>) attributes {dimension_semantics = [#tpu.dimension_semantics<parallel>, #tpu.dimension_semantics<parallel>], iteration_bounds = array<i64: 1, 1>, scalar_prefetch = 0 : i64, scratch_operands = 0 : i64, tpu.core_type = #tpu.core_type<tc>, window_params = [{transform_indices = @transform_0, window_bounds = array<i64: 2, 4, 256>}, {transform_indices = @transform_1, window_bounds = array<i64: 2, 4, 256>}]} {
    %c0 = arith.constant 0 : index
    %c0_0 = arith.constant 0 : index
    %c0_1 = arith.constant 0 : index
    %0 = vector.load %arg2[%c0, %c0_0, %c0_1] : memref<2x4x256xf32, #tpu.memory_space<vmem>>, vector<2x4x256xf32>
    %1 = arith.mulf %0, %0 : vector<2x4x256xf32>
    %cst = arith.constant dense<0.000000e+00> : vector<2x256xf32>
    %2 = vector.multi_reduction <add>, %1, %cst [1] : vector<2x4x256xf32> to vector<2x256xf32>
    %3 = vector.shape_cast %2 : vector<2x256xf32> to vector<2x1x256xf32>
    %cst_2 = arith.constant 1.000000e-24 : f32
    %4 = vector.broadcast %cst_2 : f32 to vector<2x1x256xf32>
    %5 = arith.maximumf %3, %4 : vector<2x1x256xf32>
    %6 = math.rsqrt %5 : vector<2x1x256xf32>
    %7 = vector.broadcast %6 : vector<2x1x256xf32> to vector<2x4x256xf32>
    %8 = arith.mulf %0, %7 : vector<2x4x256xf32>
    %c0_3 = arith.constant 0 : index
    %c0_4 = arith.constant 0 : index
    %c0_5 = arith.constant 0 : index
    %9 = vector.load %arg3[%c0_3, %c0_4, %c0_5] : memref<2x4x256xf32, #tpu.memory_space<vmem>>, vector<2x4x256xf32>
    tpu.vector_store %arg3[%c0_3, %c0_4, %c0_5], %8 {strides = array<i32>} : memref<2x4x256xf32, #tpu.memory_space<vmem>>, vector<2x4x256xf32>,
    return
  }
  func.func @transform_0(%arg0: i32, %arg1: i32) -> (i32, i32, i32) {
    %c0_i32 = arith.constant 0 : i32
    %c0_i32_0 = arith.constant 0 : i32
    return %arg0, %c0_i32, %arg1 : i32, i32, i32
  }
  func.func @transform_1(%arg0: i32, %arg1: i32) -> (i32, i32, i32) {
    %c0_i32 = arith.constant 0 : i32
    %c0_i32_0 = arith.constant 0 : i32
    return %arg0, %c0_i32, %arg1 : i32, i32, i32
  }
}

</mosaic_0001>

<bundles_post_ra>
// kernel: l2_normalize.1
= control target key start
LH: loop header
LB: loop body
LE: loop exit
PB: predicated region body
PF: predicated region fallthrough
CT: control target
= control target key end

     0   :  { %vm18_vm0 = vcmask 1043456   ;;  %s101_s0 = inlined_call_operand.vmem [shape: f32[2,4,256], index: 0, kind: input, shape index: {}]   ;;  %s102_s1 = inlined_call_operand.vmem [shape: f32[2,4,256], index: 1, kind: output, shape index: {}]  }
   0x1   :  { %v8_v0 = vld [vmem:[%s101_s0] sm:$0xff]  ;;  %v9_v1 = vld [vmem:[%s101_s0 + $0x8] sm:$0xff] }
   0x2   :  { %v10_v2 = vmul.f32 %v8_v0, %v8_v0  ;;  %v11_v3 = vmul.f32 %v9_v1, %v9_v1 }
   0x4   :  { %v14_v4 = vcombine.high %v10_v2, %v10_v2  ;;  %v19_v5 = vsel %vm18_vm0, %v10_v2, 0.0  ;;  %v15_v6 = vcombine.high %v11_v3, %v11_v3  ;;  %v33_v7 = vsel %vm18_vm0, %v11_v3, 0.0 }
   0x5   :  { %v20_v8 = vrot.slane %v19_v5, 4  ;;  %v34_v9 = vrot.slane %v33_v7, 4 }
   0x6   :  { %v26_v10 = vsel %vm18_vm0, %v14_v4, 0.0  ;;  %v40_v11 = vsel %vm18_vm0, %v15_v6, 0.0 }
   0x7   :  { %v21_v12 = vadd.f32 %v20_v8, %v19_v5  ;;  %v27_v13 = vrot.slane %v26_v10, 4  ;;  %v35_v14 = vadd.f32 %v34_v9, %v33_v7  ;;  %v41_v15 = vrot.slane %v40_v11, 4 }
   0x9   :  { %v22_v16 = vrot.slane %v21_v12, 2  ;;  %v28_v17 = vadd.f32 %v27_v13, %v26_v10  ;;  %v36_v18 = vrot.slane %v35_v14, 2  ;;  %v42_v19 = vadd.f32 %v41_v15, %v40_v11 }
   0xb   :  { %v23_v20 = vadd.f32 %v22_v16, %v21_v12  ;;  %v29_v21 = vrot.slane %v28_v17, 2  ;;  %v37_v22 = vadd.f32 %v36_v18, %v35_v14  ;;  %v43_v23 = vrot.slane %v42_v19, 2 }
   0xd   :  { %v24_v24 = vrot.slane %v23_v20, 1  ;;  %v30_v25 = vadd.f32 %v29_v21, %v28_v17  ;;  %v38_v26 = vrot.slane %v37_v22, 1  ;;  %v44_v27 = vadd.f32 %v43_v23, %v42_v19 }
   0xf   :  { %v25_v28 = vadd.f32 %v24_v24, %v23_v20  ;;  %v31_v29 = vrot.slane %v30_v25, 1  ;;  %v39_v30 = vadd.f32 %v38_v26, %v37_v22  ;;  %v45_v31 = vrot.slane %v44_v27, 1 }
  0x11   :  { %v32_v32 = vadd.f32 %v31_v29, %v30_v25  ;;  %v47_v33 = vmax.f32 %v25_v28, 1e-24  ;;  %v46_v34 = vadd.f32 %v45_v31, %v44_v27  ;;  %v49_v35 = vmax.f32 %v39_v30, 1e-24 }
  0x13   :  { %v48_v36 = vmax.f32 %v32_v32, 1e-24  ;;  %71 = vrsqrt.f32 %v47_v33  ;;  %v50_v37 = vmax.f32 %v46_v34, 1e-24 }
  0x14   :  { %73 = vrsqrt.f32 %v49_v35 }
  0x15   :  { %75 = vrsqrt.f32 %v48_v36 }
  0x16   :  { %77 = vrsqrt.f32 %v50_v37 }
  0x1d   :  { %v72_v38 = vpop.eup %71 }
  0x1e   :  { %v74_v39 = vpop.eup %73 }
  0x1f   :  { %v76_v40 = vpop.eup %75 }
  0x20   :  { %v78_v41 = vpop.eup %77  ;;  %v59_v42 = vcombine.low %v72_v38, %v76_v40 }
  0x21   :  { %v60_v43 = vcombine.low %v74_v39, %v78_v41 }
  0x22   :  { %v63_v44 = vmul.f32 %v59_v42, %v8_v0 }
  0x23   :  { %v64_v45 = vmul.f32 %v60_v43, %v9_v1 }
  0x24   :  { %65 = vst [vmem:[%s102_s1] sm:$0xff] %v63_v44 }
  0x25   :  { %66 = vst [vmem:[%s102_s1 + $0x8] sm:$0xff] %v64_v45 }

</bundles_post_ra>
